<compile_context>
chip_gen: v7x
topology: tpu7x:2x2x1
jax: 0.10.0
libtpu: 0.0.40
codegen_flags: <defaults>
</compile_context>

<pallas_src>
import jax
import jax.numpy as jnp
from jax.experimental import pallas as pl
from jax.experimental.pallas import tpu as pltpu


def _round_up(x, m):
    return (x + m - 1) // m * m


def _statistic_learning_kernel(x_ref, w1_ref, b1_ref, w2_ref, b2_ref, o_ref):
    """One row tile: fused Linear(S->H) -> ReLU -> Linear(H->D)."""
    x = x_ref[...]                                        # (tile_n, S) bf16
    h = jnp.dot(x, w1_ref[...],                           # MXU, f32 accumulate
                preferred_element_type=jnp.float32)
    h = jnp.maximum(h + b1_ref[...], 0.0)                 # f32 bias + ReLU (VPU)
    o = jnp.dot(h.astype(jnp.bfloat16), w2_ref[...],      # MXU, f32 accumulate
                preferred_element_type=jnp.float32)
    o_ref[...] = (o + b2_ref[...]).astype(o_ref.dtype)


def init_params(key, statistic_nums, d_model):
    """PyTorch-style Linear init; weights stored transposed as (in, out), f32."""
    hidden = statistic_nums * 2
    k1, k2, k3, k4 = jax.random.split(key, 4)
    lim1 = 1.0 / jnp.sqrt(jnp.float32(statistic_nums))
    w1 = jax.random.uniform(k1, (statistic_nums, hidden), jnp.float32, -lim1, lim1)
    b1 = jax.random.uniform(k2, (1, hidden), jnp.float32, -lim1, lim1)
    lim2 = 1.0 / jnp.sqrt(jnp.float32(hidden))
    w2 = jax.random.uniform(k3, (hidden, d_model), jnp.float32, -lim2, lim2)
    b2 = jax.random.uniform(k4, (1, d_model), jnp.float32, -lim2, lim2)
    return (w1, b1, w2, b2)


def prepare_params(params):
    """One-time prep (do NOT redo per forward call): bf16 weights, f32 biases."""
    w1, b1, w2, b2 = params
    return (w1.astype(jnp.bfloat16), b1.astype(jnp.float32),
            w2.astype(jnp.bfloat16), b2.astype(jnp.float32))


def _choose_tile_n(N, tile_n):
    if tile_n is None:
        # Big tiles amortize the ~0.35 us/step overhead (mem-bound roofline).
        tile_n = 2048
    tile_n = max(8, _round_up(tile_n, 8))
    if N >= 16:
        # Keep >= 2 grid steps when N permits so v7x megacore has work to shard.
        half = _round_up(pl.cdiv(N, 2), 8)
        tile_n = min(tile_n, half)
    else:
        tile_n = min(tile_n, _round_up(max(N, 1), 8))
    return tile_n


def statistic_learning(x, prepared_params, *, tile_n=None):
    """x: (N, statistic_nums) -> (N, d_model) f32."""
    w1, b1, w2, b2 = prepared_params
    N, S = x.shape
    H = w1.shape[1]          # = 2 * statistic_nums
    D = w2.shape[1]          # = d_model

    tile_n = _choose_tile_n(N, tile_n)
    N_p = _round_up(N, tile_n)
    grid = (N_p // tile_n,)

    # bf16 streaming halves HBM bytes on the memory-bound path; accumulation
    # stays f32 in-kernel. (Ideally the producer already emits bf16.)
    xb = x.astype(jnp.bfloat16)
    if N_p != N:
        xb = jnp.pad(xb, ((0, N_p - N), (0, 0)))   # rows only; features unpadded

    # VMEM budget: double-buffered x/out tiles + resident weights/biases +
    # (tile_n, H) f32 intermediate + bf16 recast, with 2x headroom; clamped
    # below v7x's 64 MiB physical per-TC VMEM.
    est_bytes = (
        2 * tile_n * S * 2            # bf16 input tiles (double-buffered)
        + 2 * tile_n * D * 4          # f32 output tiles (double-buffered)
        + 2 * (S * H + H * D) * 2     # bf16 weights
        + 2 * (H + D) * 4             # f32 biases
        + tile_n * H * (4 + 2)        # f32 hidden + bf16 recast
    )
    vmem_limit = int(min(48 * 2**20, max(4 * 2**20, 2 * est_bytes)))

    cost = pl.CostEstimate(
        flops=2 * N * S * H + 2 * N * H * D,
        transcendentals=0,
        bytes_accessed=(N * S * 2 + N * D * 4
                        + (S * H + H * D) * 2 + (H + D) * 4),
    )

    out = pl.pallas_call(
        _statistic_learning_kernel,
        out_shape=jax.ShapeDtypeStruct((N_p, D), jnp.float32),
        grid=grid,
        in_specs=[
            pl.BlockSpec((tile_n, S), lambda i: (i, 0)),   # streamed rows (bf16)
            pl.BlockSpec((S, H), lambda i: (0, 0)),        # W1 (resident, bf16)
            pl.BlockSpec((1, H), lambda i: (0, 0)),        # b1 (f32)
            pl.BlockSpec((H, D), lambda i: (0, 0)),        # W2 (resident, bf16)
            pl.BlockSpec((1, D), lambda i: (0, 0)),        # b2 (f32)
        ],
        out_specs=pl.BlockSpec((tile_n, D), lambda i: (i, 0)),
        compiler_params=pltpu.CompilerParams(
            dimension_semantics=("parallel",),   # megacore row-tile sharding on v7x
            vmem_limit_bytes=vmem_limit,
        ),
        cost_estimate=cost,
    )(xb, w1, b1, w2, b2)

    if N_p != N:
        out = out[:N]
    return out


if __name__ == "__main__":
    statistic_nums = 16
    d_model = 32
    batch = 8

    key = jax.random.PRNGKey(0)
    kx, kp = jax.random.split(key)
    x = jax.random.normal(kx, (batch, statistic_nums), jnp.float32)
    params = init_params(kp, statistic_nums, d_model)
    prepared = prepare_params(params)

    out = statistic_learning(x, prepared)
    out = jax.block_until_ready(out)
    assert out.shape == (batch, d_model), out.shape

    # Pure-JAX reference mirroring the kernel numerics:
    # bf16 matmul inputs, f32 accumulation, f32 bias + ReLU.
    w1, b1, w2, b2 = params
    h = jnp.dot(x.astype(jnp.bfloat16), w1.astype(jnp.bfloat16),
                preferred_element_type=jnp.float32) + b1
    h = jnp.maximum(h, 0.0)
    ref = jnp.dot(h.astype(jnp.bfloat16), w2.astype(jnp.bfloat16),
                  preferred_element_type=jnp.float32) + b2
    assert jnp.allclose(out, ref, rtol=1e-2, atol=1e-2), float(
        jnp.max(jnp.abs(out - ref))
    )

    print("KERNEL_OK")
</pallas_src>

<mosaic_0001>
module attributes {stable_mosaic.version = 11 : i64} {
  func.func @_statistic_learning_kernel(%arg0: i32, %arg1: memref<8x16xbf16, #tpu.memory_space<vmem>>, %arg2: memref<16x32xbf16, #tpu.memory_space<vmem>>, %arg3: memref<1x32xf32, #tpu.memory_space<vmem>>, %arg4: memref<32x32xbf16, #tpu.memory_space<vmem>>, %arg5: memref<1x32xf32, #tpu.memory_space<vmem>>, %arg6: memref<8x32xf32, #tpu.memory_space<vmem>>) attributes {dimension_semantics = [#tpu.dimension_semantics<parallel>], iteration_bounds = array<i64: 1>, scalar_prefetch = 0 : i64, scratch_operands = 0 : i64, tpu.core_type = #tpu.core_type<tc>, window_params = [{transform_indices = @transform_0, window_bounds = array<i64: 8, 16>}, {pipeline_mode = #tpu.pipeline_mode<synchronous>, transform_indices = @transform_1, window_bounds = array<i64: 16, 32>}, {pipeline_mode = #tpu.pipeline_mode<synchronous>, transform_indices = @transform_2, window_bounds = array<i64: 1, 32>}, {pipeline_mode = #tpu.pipeline_mode<synchronous>, transform_indices = @transform_3, window_bounds = array<i64: 32, 32>}, {pipeline_mode = #tpu.pipeline_mode<synchronous>, transform_indices = @transform_4, window_bounds = array<i64: 1, 32>}, {transform_indices = @transform_5, window_bounds = array<i64: 8, 32>}]} {
    %c0 = arith.constant 0 : index
    %c0_0 = arith.constant 0 : index
    %0 = vector.load %arg1[%c0, %c0_0] : memref<8x16xbf16, #tpu.memory_space<vmem>>, vector<8x16xbf16>
    %c0_1 = arith.constant 0 : index
    %c0_2 = arith.constant 0 : index
    %1 = vector.load %arg2[%c0_1, %c0_2] : memref<16x32xbf16, #tpu.memory_space<vmem>>, vector<16x32xbf16>
    %cst = arith.constant dense<0.000000e+00> : vector<8x32xf32>
    %2 = tpu.matmul %0, %1, %cst {dimension_numbers = #tpu.dot_dimension_numbers<[1], [0], [0], [1], [0, 0, 1, 1], [], []>} : vector<8x16xbf16>, vector<16x32xbf16>, vector<8x32xf32> -> vector<8x32xf32>
    %c0_3 = arith.constant 0 : index
    %c0_4 = arith.constant 0 : index
    %3 = vector.load %arg3[%c0_3, %c0_4] : memref<1x32xf32, #tpu.memory_space<vmem>>, vector<1x32xf32>
    %4 = vector.broadcast %3 : vector<1x32xf32> to vector<8x32xf32>
    %5 = arith.addf %2, %4 : vector<8x32xf32>
    %cst_5 = arith.constant 0.000000e+00 : f32
    %6 = vector.broadcast %cst_5 : f32 to vector<8x32xf32>
    %7 = arith.maximumf %5, %6 : vector<8x32xf32>
    %8 = arith.truncf %7 : vector<8x32xf32> to vector<8x32xbf16>
    %c0_6 = arith.constant 0 : index
    %c0_7 = arith.constant 0 : index
    %9 = vector.load %arg4[%c0_6, %c0_7] : memref<32x32xbf16, #tpu.memory_space<vmem>>, vector<32x32xbf16>
    %cst_8 = arith.constant dense<0.000000e+00> : vector<8x32xf32>
    %10 = tpu.matmul %8, %9, %cst_8 {dimension_numbers = #tpu.dot_dimension_numbers<[1], [0], [0], [1], [0, 0, 1, 1], [], []>} : vector<8x32xbf16>, vector<32x32xbf16>, vector<8x32xf32> -> vector<8x32xf32>
    %c0_9 = arith.constant 0 : index
    %c0_10 = arith.constant 0 : index
    %11 = vector.load %arg5[%c0_9, %c0_10] : memref<1x32xf32, #tpu.memory_space<vmem>>, vector<1x32xf32>
    %12 = vector.broadcast %11 : vector<1x32xf32> to vector<8x32xf32>
    %13 = arith.addf %10, %12 : vector<8x32xf32>
    %c0_11 = arith.constant 0 : index
    %c0_12 = arith.constant 0 : index
    %14 = vector.load %arg6[%c0_11, %c0_12] : memref<8x32xf32, #tpu.memory_space<vmem>>, vector<8x32xf32>
    tpu.vector_store %arg6[%c0_11, %c0_12], %13 {strides = array<i32>} : memref<8x32xf32, #tpu.memory_space<vmem>>, vector<8x32xf32>,
    return
  }
  func.func @transform_0(%arg0: i32) -> (i32, i32) {
    %c0_i32 = arith.constant 0 : i32
    %c0_i32_0 = arith.constant 0 : i32
    return %arg0, %c0_i32 : i32, i32
  }
  func.func @transform_1(%arg0: i32) -> (i32, i32) {
    %c0_i32 = arith.constant 0 : i32
    %c0_i32_0 = arith.constant 0 : i32
    %c0_i32_1 = arith.constant 0 : i32
    return %c0_i32, %c0_i32_0 : i32, i32
  }
  func.func @transform_2(%arg0: i32) -> (i32, i32) {
    %c0_i32 = arith.constant 0 : i32
    %c0_i32_0 = arith.constant 0 : i32
    %c0_i32_1 = arith.constant 0 : i32
    return %c0_i32, %c0_i32_0 : i32, i32
  }
  func.func @transform_3(%arg0: i32) -> (i32, i32) {
    %c0_i32 = arith.constant 0 : i32
    %c0_i32_0 = arith.constant 0 : i32
    %c0_i32_1 = arith.constant 0 : i32
    return %c0_i32, %c0_i32_0 : i32, i32
  }
  func.func @transform_4(%arg0: i32) -> (i32, i32) {
    %c0_i32 = arith.constant 0 : i32
    %c0_i32_0 = arith.constant 0 : i32
    %c0_i32_1 = arith.constant 0 : i32
    return %c0_i32, %c0_i32_0 : i32, i32
  }
  func.func @transform_5(%arg0: i32) -> (i32, i32) {
    %c0_i32 = arith.constant 0 : i32
    %c0_i32_0 = arith.constant 0 : i32
    return %arg0, %c0_i32 : i32, i32
  }
}

</mosaic_0001>

<bundles_post_ra>
// kernel: tpu_custom_call.1
= control target key start
LH: loop header
LB: loop body
LE: loop exit
PB: predicated region body
PF: predicated region fallthrough
CT: control target
= control target key end

     0   :  { %10 = vsyncpa [#allocation3], 0  ;;  %s436_s0 = inlined_call_operand.hbm [shape: bf16[8,16], index: 0, kind: input, shape index: {}]   ;;  %s437_s1 = inlined_call_operand.hbm [shape: bf16[16,32], index: 1, kind: input, shape index: {}]   ;;  %s438_s2 = inlined_call_operand.vmem [shape: f32[1,32], index: 2, kind: input, shape index: {}]   ;;  %s439_s3 = inlined_call_operand.hbm [shape: bf16[32,32], index: 3, kind: input, shape index: {}]   ;;  %s440_s4 = inlined_call_operand.vmem [shape: f32[1,32], index: 4, kind: input, shape index: {}]   ;;  %s441_s5 = inlined_call_operand.hbm [shape: f32[8,32], index: 5, kind: output, shape index: {}]  }
   0x1   :  { %11 = vsyncpa [#allocation6], 0 }
   0x2   :  { %12 = vsyncpa [#allocation4], 0  ;;  %s338_s18 = smov [#allocation5]   ;;  %s244_s22 = scalar_lea.hbm %s437_s1, 128 }
   0x3   :  { %s28_s19 = sshll.u32 %s338_s18, 4  ;;  %p245_p0 = scmp.ne.s32.totalorder %s437_s1, %s244_s22  ;;  %s29_s19 = int_to_ptr.vmem [resolvable:$true] %s28_s19 }
   0x4   :  { %p248_p1 = scmp.lt.u32.totalorder %s244_s22, %s437_s1 }
   0x6   :  { %p250_p2 = pnand %p248_p1, %p245_p0 }
   0x8   :  { %253 = shalt.err (!%p250_p2)
}
   0x9   :  { %s254_s27 = scalar_lea.vmem %s29_s19, 128  ;;  %p259_p4 = scmp.lt.s32.totalorder %s29_s19, %s29_s19 }
   0xa   :  { %p255_p3 = scmp.ne.s32.totalorder %s29_s19, %s254_s27  ;;  %p260_p5 = scmp.lt.s32.totalorder %s254_s27, %s254_s27 }
   0xc   :  { %p261_p6 = por %p260_p5, %p259_p4 }
   0xe   :  { %p262_p7 = pnand %p261_p6, %p255_p3 }
  0x10   :  { %265 = shalt.err (!%p262_p7)
}
  0x11   :  { %s339_s28 = smov 64   ;;  %s340_s29 = smov 4  }
  0x12   :  { %34 = dma.hbm_to_vmem [thread:$0]  %s437_s1, 128, %s29_s19, [#allocation6], %s339_s28, %s339_s28, %s340_s29  }
  0x13   :  { %s341_s7 = smov [#allocation2]   ;;  %s342_s9 = smov [#allocation7]  }
  0x14   :  { %s19_s8 = sshll.u32 %s341_s7, 4  ;;  %s42_s10 = sshll.u32 %s342_s9, 4  ;;  %s20_s8 = int_to_ptr.vmem [resolvable:$true] %s19_s8  ;;  %s43_s10 = int_to_ptr.vmem [resolvable:$true] %s42_s10 }
  0x15   :  { %s266_s13 = scalar_lea.hbm %s436_s0, 64 }
  0x16   :  { %p267_p8 = scmp.ne.s32.totalorder %s436_s0, %s266_s13  ;;  %p270_p9 = scmp.lt.u32.totalorder %s266_s13, %s436_s0 }
  0x18   :  { %p272_p10 = pnand %p270_p9, %p267_p8 }
  0x1a   :  { %275 = shalt.err (!%p272_p10)
}
  0x1b   :  { %s276_s1 = scalar_lea.vmem %s20_s8, 64  ;;  %p281_p12 = scmp.lt.s32.totalorder %s20_s8, %s20_s8 }
  0x1c   :  { %p277_p11 = scmp.ne.s32.totalorder %s20_s8, %s276_s1  ;;  %p282_p13 = scmp.lt.s32.totalorder %s276_s1, %s276_s1 }
  0x1e   :  { %p283_p0 = por %p282_p13, %p281_p12 }
  0x20   :  { %p284_p1 = pnand %p283_p0, %p277_p11 }
  0x22   :  { %287 = shalt.err (!%p284_p1)
}
  0x23   :  { %22 = dma.hbm_to_vmem [thread:$0]  %s436_s0, 64, %s20_s8, [#allocation3]  }
  0x24   :  { %s288_s22 = scalar_lea.hbm %s439_s3, 256 }
  0x25   :  { %p289_p2 = scmp.ne.s32.totalorder %s439_s3, %s288_s22  ;;  %p292_p3 = scmp.lt.u32.totalorder %s288_s22, %s439_s3 }
  0x27   :  { %p294_p4 = pnand %p292_p3, %p289_p2 }
  0x29   :  { %297 = shalt.err (!%p294_p4)
}
  0x2a   :  { %s298_s27 = scalar_lea.vmem %s43_s10, 256  ;;  %p303_p6 = scmp.lt.s32.totalorder %s43_s10, %s43_s10 }
  0x2b   :  { %p299_p5 = scmp.ne.s32.totalorder %s43_s10, %s298_s27  ;;  %p304_p7 = scmp.lt.s32.totalorder %s298_s27, %s298_s27 }
  0x2d   :  { %p305_p8 = por %p304_p7, %p303_p6 }
  0x2f   :  { %p306_p9 = pnand %p305_p8, %p299_p5 }
  0x31   :  { %309 = shalt.err (!%p306_p9)
}
  0x32   :  { %48 = dma.hbm_to_vmem [thread:$0]  %s439_s3, 256, %s43_s10, [#allocation6], %s339_s28, %s339_s28, %s340_s29  }
  0x33   :  { %332 = dma.done.wait [#allocation3], 64  }
  0x34   :  { %333 = vsyncadd [#allocation3], 4294967232 }
  0x35   :  { %334 = dma.done.wait [#allocation6], 384  }
  0x36   :  { %335 = vsyncadd [#allocation6], 4294966912  ;;  %v343_v0 = vmov 0.0   ;;  %vm344_vm0 = vmmov 0   ;;  %v241_v1 = vld [vmem:[#allocation5] sm:$0xff]   ;;  %vm77_vm1 = vcmask 130048  }
  0x37   :  { %219 = vmatprep.subr.bf16.mxu0 %v343_v0  ;;  %221 = vmatprep.mubr.msk.bf16.mxu0 %vm344_vm0, %v343_v0  ;;  %v61_v2 = vld [vmem:[#allocation2] sm:$0xf]  ;;  %v242_v3 = vld [vmem:[#allocation7] sm:$0xff]   ;;  %v243_v4 = vld [vmem:[#allocation7 + $0x8] sm:$0xff]   ;;  %vm146_vm2 = vcmask 261120   ;;  %s345_s7 = smov [#allocation8]  }
  0x38   :  { %225 = vmatprep.subr.bf16.mxu1 %v343_v0  ;;  %229 = vmatprep.mubr.msk.bf16.mxu1 %vm344_vm0, %v343_v0  ;;  %v207_v5 = vld [vmem:[%s438_s2] ss:$0 sm:$0xff]  ;;  %s197_s8 = sshll.u32 %s345_s7, 4  ;;  %s198_s8 = int_to_ptr.vmem [resolvable:$true] %s197_s8 }
  0x39   :  { %220 = vmatpush3.bf16.msra.mxu0 %v241_v1  ;;  %226 = vmatpush3.bf16.msra.mxu1 %v242_v3  ;;  %v210_v13 = vld [vmem:[%s440_s4] ss:$0 sm:$0xff]  ;;  %s310_s2 = scalar_lea.vmem %s198_s8, 128  ;;  %p315_p11 = scmp.lt.s32.totalorder %s198_s8, %s198_s8 }
  0x3a   :  { %227 = vmatprep.subr.bf16.mxu1 %v343_v0  ;;  %p311_p10 = scmp.ne.s32.totalorder %s198_s8, %s310_s2  ;;  %p316_p12 = scmp.lt.s32.totalorder %s310_s2, %s310_s2 }
  0x3c   :  { %222 = vmatmul.mubr.msk.bf16.vlgmr.msra.gmra.mrb[0].mxu0 %vm77_vm1, %v61_v2  ;;  %p317_p13 = por %p316_p12, %p315_p11 }
  0x3d   :  { %228 = vmatpush3.bf16.msra.mxu1 %v243_v4 }
  0x3e   :  { %p318_p0 = pnand %p317_p13, %p311_p10 }
 0x10f   :  { %v115_v6 = vpop.f32.mrb[0].mxu0 }
 0x110   :  { %v116_v7 = vadd.f32 %v207_v5, %v115_v6  ;;  %v223_v8 = vpop.f32.mrb[1].mxu0 }
 0x111   :  { %v118_v9 = vpop.f32.mrb[2].mxu0 }
 0x112   :  { %v121_v10 = vmax.f32 %v116_v7, 0.0  ;;  %v224_v11 = vpop.f32.mrb[3].mxu0 }
 0x114   :  { %v122_v12 = vpack.c.bf16 %v121_v10, %v121_v10 }
 0x116   :  { %230 = vmatmul.mubr.msk.bf16.vlgmr.msra.gmra.mrb[0].mxu1 %vm146_vm2, %v122_v12 }
 0x1e9   :  { %v184_v14 = vpop.f32.mrb[0].mxu1 }
 0x1ea   :  { %v185_v15 = vadd.f32 %v210_v13, %v184_v14  ;;  %v231_v16 = vpop.f32.mrb[1].mxu1 }
 0x1eb   :  { %v187_v17 = vpop.f32.mrb[2].mxu1 }
 0x1ec   :  { %190 = vst.msk [vmem:[#allocation8] sm:$0xff] %vm146_vm2, %v185_v15  ;;  %v232_v18 = vpop.f32.mrb[3].mxu1 }
 0x1ed   :  { %321 = shalt.err (!%p318_p0)
}
 0x1ee   :  { %s322_s4 = scalar_lea.hbm %s441_s5, 128 }
 0x1ef   :  { %p323_p1 = scmp.ne.s32.totalorder %s441_s5, %s322_s4  ;;  %p326_p2 = scmp.lt.u32.totalorder %s322_s4, %s441_s5 }
 0x1f1   :  { %p328_p3 = pnand %p326_p2, %p323_p1 }
 0x1f3   :  { %331 = shalt.err (!%p328_p3)
}
 0x1f4   :  { %200 = dma.vmem_to_hbm [thread:$0]  %s198_s8, 128, %s441_s5, [#allocation4]  }
 0x1f5   :  { %336 = dma.done.wait [#allocation4], 128  }
 0x1f6   :  { %337 = vsyncadd [#allocation4], 4294967168 }
 0x1f7   :  { %204 = vsyncpa [#allocation3], 1 }
 0x1f8   :  { %205 = vsyncpa [#allocation6], 1 }
 0x1f9   :  { %206 = vsyncpa [#allocation4], 1 }

</bundles_post_ra>
